<compile_context>
chip_gen: v5e
topology: v5e:2x2
jax: 0.10.0
libtpu: 0.0.40
codegen_flags: <defaults>
</compile_context>

<pallas_src>
import jax
import jax.numpy as jnp
from jax.experimental import pallas as pl
from jax.experimental.pallas import tpu as pltpu


def _round_up(a, m):
    return ((a + m - 1) // m) * m


def _mlp_kernel(x_ref, w1_ref, b1_ref, w2_ref, b2_ref, w3_ref, b3_ref, o_ref):
    x = x_ref[...]                                                       # (TB, 23) compute dtype
    h1 = jnp.dot(x, w1_ref[...], preferred_element_type=jnp.float32)    # (TB, 128) f32 acc
    h1 = jnp.maximum(h1 + b1_ref[...], 0.0)                             # relu(fc1), f32
    # dropout1: identity in eval/inference mode
    h2 = jnp.dot(h1.astype(w2_ref.dtype), w2_ref[...],
                 preferred_element_type=jnp.float32)                    # (TB, 64) f32 acc
    h2 = jnp.maximum(h2 + b2_ref[...], 0.0)                             # relu(fc2), f32
    # dropout2: identity in eval/inference mode
    out = jnp.dot(h2.astype(w3_ref.dtype), w3_ref[...],
                  preferred_element_type=jnp.float32)                   # (TB, 2) f32 acc
    o_ref[...] = (out + b3_ref[...]).astype(o_ref.dtype)                # direct (TB, 2) store


def fight_predictor_forward(x, w1, b1, w2, b2, w3, b3, *, tb=2048,
                            compute_dtype=jnp.bfloat16):
    """x: (B, 23) f32. w*: (in, out) f32, b*: (1, out) f32. Returns (B, 2) f32 logits."""
    B, F = x.shape
    n_out = w3.shape[1]  # 2

    # --- batch tiling ------------------------------------------------------
    # Sublane-align, then aim for >= 2 grid steps (v7x megacore) when possible,
    # then pad B up to a multiple of TB so the grid divides exactly.
    B8 = _round_up(B, 8)
    if B8 > 8:
        TB = min(tb, _round_up(pl.cdiv(B8, 2), 8))
    else:
        TB = B8
    TB = max(TB, 8)
    B_pad = _round_up(B8, TB)
    grid = (B_pad // TB,)

    # --- dtype prep (bf16 MXU inputs, f32 accumulation; biases stay f32) ----
    xc = x.astype(compute_dtype)
    w1c = w1.astype(compute_dtype)
    w2c = w2.astype(compute_dtype)
    w3c = w3.astype(compute_dtype)

    if B_pad != B:
        xc = jnp.pad(xc, ((0, B_pad - B), (0, 0)))

    def resident(shape):
        return pl.BlockSpec(shape, lambda i: (0, 0))   # weights/biases: VMEM-resident

    d1 = w1.shape[1]
    d2 = w2.shape[1]
    flops = 2 * B_pad * (F * d1 + d1 * d2 + d2 * n_out)
    bytes_accessed = (
        xc.size * xc.dtype.itemsize
        + w1c.size * w1c.dtype.itemsize + w2c.size * w2c.dtype.itemsize
        + w3c.size * w3c.dtype.itemsize
        + b1.size * 4 + b2.size * 4 + b3.size * 4
        + B_pad * n_out * 4
    )

    out = pl.pallas_call(
        _mlp_kernel,
        out_shape=jax.ShapeDtypeStruct((B_pad, n_out), jnp.float32),
        grid=grid,
        in_specs=[
            pl.BlockSpec((TB, F), lambda i: (i, 0)),   # x: streamed per batch tile
            resident(w1c.shape), resident(b1.shape),
            resident(w2c.shape), resident(b2.shape),
            resident(w3c.shape), resident(b3.shape),
        ],
        out_specs=pl.BlockSpec((TB, n_out), lambda i: (i, 0)),  # direct 2-wide logits
        compiler_params=pltpu.CompilerParams(
            dimension_semantics=("parallel",),         # megacore sharding on v7x
            vmem_limit_bytes=32 * 1024 * 1024,
        ),
        cost_estimate=pl.CostEstimate(
            flops=flops, transcendentals=0, bytes_accessed=bytes_accessed),
    )(xc, w1c, b1, w2c, b2, w3c, b3)

    if B_pad != B:
        out = out[:B]
    return out


def init_params(key):
    """Deterministic init mimicking PyTorch Linear default U(-1/sqrt(fan_in), +)."""
    dims = [(23, 128), (128, 64), (64, 2)]
    params = []
    for fan_in, fan_out in dims:
        kw, kb, key = jax.random.split(key, 3)
        bound = 1.0 / (fan_in ** 0.5)
        w = jax.random.uniform(kw, (fan_in, fan_out), jnp.float32, -bound, bound)
        b = jax.random.uniform(kb, (1, fan_out), jnp.float32, -bound, bound)
        params += [w, b]
    return params


def _reference(x, w1, b1, w2, b2, w3, b3):
    h = jnp.maximum(x @ w1 + b1, 0.0)
    h = jnp.maximum(h @ w2 + b2, 0.0)
    return h @ w3 + b3


if __name__ == "__main__":
    key = jax.random.PRNGKey(0)
    kx, kx2, kx3, kp = jax.random.split(key, 4)

    w1, b1, w2, b2, w3, b3 = init_params(kp)

    # 1) f32 compute path, single tile (B=8): exact parity with the reference.
    B = 8
    x = jax.random.normal(kx, (B, 23), jnp.float32)
    out = fight_predictor_forward(x, w1, b1, w2, b2, w3, b3,
                                  compute_dtype=jnp.float32)
    out = jax.block_until_ready(out)
    ref = _reference(x, w1, b1, w2, b2, w3, b3)
    assert out.shape == (B, 2)
    assert jnp.allclose(out, ref, atol=1e-4), "mismatch vs reference (B=8, f32)"

    # 2) default bf16 compute path, multi-tile grid (B=48, tb=16 -> 3 steps).
    B2 = 48
    x2 = jax.random.normal(kx2, (B2, 23), jnp.float32)
    out2 = fight_predictor_forward(x2, w1, b1, w2, b2, w3, b3, tb=16)
    out2 = jax.block_until_ready(out2)
    ref2 = _reference(x2, w1, b1, w2, b2, w3, b3)
    assert out2.shape == (B2, 2)
    assert jnp.allclose(out2, ref2, atol=3e-2), "mismatch vs reference (B=48, bf16)"

    # 3) ragged batch (B=10 -> padded to 16, two 8-row tiles, rows sliced back).
    B3 = 10
    x3 = jax.random.normal(kx3, (B3, 23), jnp.float32)
    out3 = fight_predictor_forward(x3, w1, b1, w2, b2, w3, b3)
    out3 = jax.block_until_ready(out3)
    ref3 = _reference(x3, w1, b1, w2, b2, w3, b3)
    assert out3.shape == (B3, 2)
    assert jnp.allclose(out3, ref3, atol=3e-2), "mismatch vs reference (B=10, ragged)"

    print("KERNEL_OK")
</pallas_src>

<mosaic_0001>
module attributes {stable_mosaic.version = 11 : i64} {
  func.func @_mlp_kernel(%arg0: i32, %arg1: memref<8x23xf32, #tpu.memory_space<vmem>>, %arg2: memref<23x128xf32, #tpu.memory_space<vmem>>, %arg3: memref<1x128xf32, #tpu.memory_space<vmem>>, %arg4: memref<128x64xf32, #tpu.memory_space<vmem>>, %arg5: memref<1x64xf32, #tpu.memory_space<vmem>>, %arg6: memref<64x2xf32, #tpu.memory_space<vmem>>, %arg7: memref<1x2xf32, #tpu.memory_space<vmem>>, %arg8: memref<8x2xf32, #tpu.memory_space<vmem>>) attributes {dimension_semantics = [#tpu.dimension_semantics<parallel>], iteration_bounds = array<i64: 1>, scalar_prefetch = 0 : i64, scratch_operands = 0 : i64, tpu.core_type = #tpu.core_type<tc>, window_params = [{transform_indices = @transform_0, window_bounds = array<i64: 8, 23>}, {pipeline_mode = #tpu.pipeline_mode<synchronous>, transform_indices = @transform_1, window_bounds = array<i64: 23, 128>}, {pipeline_mode = #tpu.pipeline_mode<synchronous>, transform_indices = @transform_2, window_bounds = array<i64: 1, 128>}, {pipeline_mode = #tpu.pipeline_mode<synchronous>, transform_indices = @transform_3, window_bounds = array<i64: 128, 64>}, {pipeline_mode = #tpu.pipeline_mode<synchronous>, transform_indices = @transform_4, window_bounds = array<i64: 1, 64>}, {pipeline_mode = #tpu.pipeline_mode<synchronous>, transform_indices = @transform_5, window_bounds = array<i64: 64, 2>}, {pipeline_mode = #tpu.pipeline_mode<synchronous>, transform_indices = @transform_6, window_bounds = array<i64: 1, 2>}, {transform_indices = @transform_7, window_bounds = array<i64: 8, 2>}]} {
    %c0 = arith.constant 0 : index
    %c0_0 = arith.constant 0 : index
    %0 = vector.load %arg1[%c0, %c0_0] : memref<8x23xf32, #tpu.memory_space<vmem>>, vector<8x23xf32>
    %c0_1 = arith.constant 0 : index
    %c0_2 = arith.constant 0 : index
    %1 = vector.load %arg2[%c0_1, %c0_2] : memref<23x128xf32, #tpu.memory_space<vmem>>, vector<23x128xf32>
    %cst = arith.constant dense<0.000000e+00> : vector<8x128xf32>
    %2 = tpu.matmul %0, %1, %cst {dimension_numbers = #tpu.dot_dimension_numbers<[1], [0], [0], [1], [0, 0, 1, 1], [], []>} : vector<8x23xf32>, vector<23x128xf32>, vector<8x128xf32> -> vector<8x128xf32>
    %c0_3 = arith.constant 0 : index
    %c0_4 = arith.constant 0 : index
    %3 = vector.load %arg3[%c0_3, %c0_4] : memref<1x128xf32, #tpu.memory_space<vmem>>, vector<1x128xf32>
    %4 = vector.broadcast %3 : vector<1x128xf32> to vector<8x128xf32>
    %5 = arith.addf %2, %4 : vector<8x128xf32>
    %cst_5 = arith.constant 0.000000e+00 : f32
    %6 = vector.broadcast %cst_5 : f32 to vector<8x128xf32>
    %7 = arith.maximumf %5, %6 : vector<8x128xf32>
    %c0_6 = arith.constant 0 : index
    %c0_7 = arith.constant 0 : index
    %8 = vector.load %arg4[%c0_6, %c0_7] : memref<128x64xf32, #tpu.memory_space<vmem>>, vector<128x64xf32>
    %cst_8 = arith.constant dense<0.000000e+00> : vector<8x64xf32>
    %9 = tpu.matmul %7, %8, %cst_8 {dimension_numbers = #tpu.dot_dimension_numbers<[1], [0], [0], [1], [0, 0, 1, 1], [], []>} : vector<8x128xf32>, vector<128x64xf32>, vector<8x64xf32> -> vector<8x64xf32>
    %c0_9 = arith.constant 0 : index
    %c0_10 = arith.constant 0 : index
    %10 = vector.load %arg5[%c0_9, %c0_10] : memref<1x64xf32, #tpu.memory_space<vmem>>, vector<1x64xf32>
    %11 = vector.broadcast %10 : vector<1x64xf32> to vector<8x64xf32>
    %12 = arith.addf %9, %11 : vector<8x64xf32>
    %cst_11 = arith.constant 0.000000e+00 : f32
    %13 = vector.broadcast %cst_11 : f32 to vector<8x64xf32>
    %14 = arith.maximumf %12, %13 : vector<8x64xf32>
    %c0_12 = arith.constant 0 : index
    %c0_13 = arith.constant 0 : index
    %15 = vector.load %arg6[%c0_12, %c0_13] : memref<64x2xf32, #tpu.memory_space<vmem>>, vector<64x2xf32>
    %cst_14 = arith.constant dense<0.000000e+00> : vector<8x2xf32>
    %16 = tpu.matmul %14, %15, %cst_14 {dimension_numbers = #tpu.dot_dimension_numbers<[1], [0], [0], [1], [0, 0, 1, 1], [], []>} : vector<8x64xf32>, vector<64x2xf32>, vector<8x2xf32> -> vector<8x2xf32>
    %c0_15 = arith.constant 0 : index
    %c0_16 = arith.constant 0 : index
    %17 = vector.load %arg7[%c0_15, %c0_16] : memref<1x2xf32, #tpu.memory_space<vmem>>, vector<1x2xf32>
    %18 = vector.broadcast %17 : vector<1x2xf32> to vector<8x2xf32>
    %19 = arith.addf %16, %18 : vector<8x2xf32>
    %c0_17 = arith.constant 0 : index
    %c0_18 = arith.constant 0 : index
    %20 = vector.load %arg8[%c0_17, %c0_18] : memref<8x2xf32, #tpu.memory_space<vmem>>, vector<8x2xf32>
    tpu.vector_store %arg8[%c0_17, %c0_18], %19 {strides = array<i32>} : memref<8x2xf32, #tpu.memory_space<vmem>>, vector<8x2xf32>,
    return
  }
  func.func @transform_0(%arg0: i32) -> (i32, i32) {
    %c0_i32 = arith.constant 0 : i32
    %c0_i32_0 = arith.constant 0 : i32
    return %arg0, %c0_i32 : i32, i32
  }
  func.func @transform_1(%arg0: i32) -> (i32, i32) {
    %c0_i32 = arith.constant 0 : i32
    %c0_i32_0 = arith.constant 0 : i32
    %c0_i32_1 = arith.constant 0 : i32
    return %c0_i32, %c0_i32_0 : i32, i32
  }
  func.func @transform_2(%arg0: i32) -> (i32, i32) {
    %c0_i32 = arith.constant 0 : i32
    %c0_i32_0 = arith.constant 0 : i32
    %c0_i32_1 = arith.constant 0 : i32
    return %c0_i32, %c0_i32_0 : i32, i32
  }
  func.func @transform_3(%arg0: i32) -> (i32, i32) {
    %c0_i32 = arith.constant 0 : i32
    %c0_i32_0 = arith.constant 0 : i32
    %c0_i32_1 = arith.constant 0 : i32
    return %c0_i32, %c0_i32_0 : i32, i32
  }
  func.func @transform_4(%arg0: i32) -> (i32, i32) {
    %c0_i32 = arith.constant 0 : i32
    %c0_i32_0 = arith.constant 0 : i32
    %c0_i32_1 = arith.constant 0 : i32
    return %c0_i32, %c0_i32_0 : i32, i32
  }
  func.func @transform_5(%arg0: i32) -> (i32, i32) {
    %c0_i32 = arith.constant 0 : i32
    %c0_i32_0 = arith.constant 0 : i32
    %c0_i32_1 = arith.constant 0 : i32
    return %c0_i32, %c0_i32_0 : i32, i32
  }
  func.func @transform_6(%arg0: i32) -> (i32, i32) {
    %c0_i32 = arith.constant 0 : i32
    %c0_i32_0 = arith.constant 0 : i32
    %c0_i32_1 = arith.constant 0 : i32
    return %c0_i32, %c0_i32_0 : i32, i32
  }
  func.func @transform_7(%arg0: i32) -> (i32, i32) {
    %c0_i32 = arith.constant 0 : i32
    %c0_i32_0 = arith.constant 0 : i32
    return %arg0, %c0_i32 : i32, i32
  }
}

</mosaic_0001>

<bundles_post_ra>
// kernel: tpu_custom_call.1
= control target key start
LH: loop header
LB: loop body
LE: loop exit
PB: predicated region body
PF: predicated region fallthrough
CT: control target
= control target key end

     0   :  { %vm38_vm0 = vcmask 1046528   ;;  %vm34_vm1 = vcmask 187392   ;;  %vm116_vm2 = vcmask 523264   ;;  %vm140_vm3 = vcmask 15360   ;;  %s288_s1 = inlined_call_operand.vmem [shape: f32[23,128], index: 1, kind: input, shape index: {}]   ;;  %s289_s3 = inlined_call_operand.vmem [shape: f32[128,64], index: 3, kind: input, shape index: {}]   ;;  %s290_s0 = inlined_call_operand.vmem [shape: f32[8,23], index: 0, kind: input, shape index: {}]   ;;  %s291_s2 = inlined_call_operand.vmem [shape: f32[1,128], index: 2, kind: input, shape index: {}]   ;;  %s292_s4 = inlined_call_operand.vmem [shape: f32[1,64], index: 4, kind: input, shape index: {}]   ;;  %s293_s5 = inlined_call_operand.vmem [shape: f32[64,2], index: 5, kind: input, shape index: {}]   ;;  %s294_s6 = inlined_call_operand.vmem [shape: f32[1,2], index: 6, kind: input, shape index: {}]   ;;  %s295_s7 = inlined_call_operand.vmem [shape: f32[8,2], index: 7, kind: output, shape index: {}]  }
   0x1   :  { %v29_v0 = vld [vmem:[%s288_s1 + $0x10] sm:$0x7f]  ;;  %v28_v1 = vld [vmem:[%s288_s1 + $0x8] sm:$0xff]  ;;  %v78_v2 = vld [vmem:[%s289_s3 + $0x78] sm:$0xff] }
   0x2   :  { %146 = vmatpush.msk.msra.mxu0 %vm38_vm0, %v29_v0  ;;  %v77_v3 = vld [vmem:[%s289_s3 + $0x70] sm:$0xff]  ;;  %v27_v4 = vld [vmem:[%s288_s1] sm:$0xff]  ;;  %83 = vmatpush.msra.mxu1 %v78_v2  ;;  %v76_v6 = vld [vmem:[%s289_s3 + $0x68] sm:$0xff] }
   0x3   :  { %v26_v5 = vld [vmem:[%s290_s0] sm:$0xff]  ;;  %v74_v8 = vld [vmem:[%s289_s3 + $0x58] sm:$0xff]  ;;  %v73_v9 = vld [vmem:[%s289_s3 + $0x50] sm:$0xff] }
   0x4   :  { %56 = vmatpush.msra.mxu0 %v28_v1  ;;  %84 = vmatpush.msra.mxu1 %v77_v3  ;;  %v75_v7 = vld [vmem:[%s289_s3 + $0x60] sm:$0xff]  ;;  %v72_v10 = vld [vmem:[%s289_s3 + $0x48] sm:$0xff]  ;;  %v70_v12 = vld [vmem:[%s289_s3 + $0x38] sm:$0xff] }
   0x5   :  { %v71_v11 = vld [vmem:[%s289_s3 + $0x40] sm:$0xff]  ;;  %v69_v13 = vld [vmem:[%s289_s3 + $0x30] sm:$0xff]  ;;  %v68_v14 = vld [vmem:[%s289_s3 + $0x28] sm:$0xff] }
   0x6   :  { %57 = vmatpush.msra.mxu0 %v27_v4  ;;  %85 = vmatpush.msra.mxu1 %v76_v6  ;;  %v67_v15 = vld [vmem:[%s289_s3 + $0x20] sm:$0xff]  ;;  %v66_v16 = vld [vmem:[%s289_s3 + $0x18] sm:$0xff]  ;;  %v65_v17 = vld [vmem:[%s289_s3 + $0x10] sm:$0xff] }
   0x7   :  { %147 = vmatmul.msk.f32.vlgmr.msra.gmra.mxu0 %vm34_vm1, %v26_v5  ;;  %v64_v18 = vld [vmem:[%s289_s3 + $0x8] sm:$0xff]  ;;  %v63_v19 = vld [vmem:[%s289_s3] sm:$0xff]  ;;  %v111_v20 = vld [vmem:[%s293_s5 + $0x38] sm:$0xff] }
   0x8   :  { %86 = vmatpush.msra.mxu1 %v75_v7  ;;  %v110_v21 = vld [vmem:[%s293_s5 + $0x30] sm:$0xff]  ;;  %128 = vmatpush.msra.mxu2 %v111_v20  ;;  %v109_v22 = vld [vmem:[%s293_s5 + $0x28] sm:$0xff]  ;;  %v108_v23 = vld [vmem:[%s293_s5 + $0x20] sm:$0xff] }
   0x9   :  { %v107_v24 = vld [vmem:[%s293_s5 + $0x18] sm:$0xff]  ;;  %v149_v25 = vld [vmem:[%s291_s2] ss:$0 sm:$0xff]  ;;  %v106_v29 = vld [vmem:[%s293_s5 + $0x10] sm:$0xff] }
   0xa   :  { %87 = vmatpush.msra.mxu1 %v74_v8  ;;  %129 = vmatpush.msra.mxu2 %v110_v21  ;;  %v105_v30 = vld [vmem:[%s293_s5 + $0x8] sm:$0xff]  ;;  %v104_v31 = vld [vmem:[%s293_s5] sm:$0xff] }
   0xb   :  { %v150_v32 = vld [vmem:[%s292_s4] ss:$0 sm:$0xff] }
   0xc   :  { %88 = vmatpush.msra.mxu1 %v73_v9  ;;  %130 = vmatpush.msra.mxu2 %v109_v22  ;;  %v151_v36 = vld [vmem:[%s294_s6] ss:$0 sm:$0xff] }
   0xe   :  { %89 = vmatpush.msra.mxu1 %v72_v10  ;;  %131 = vmatpush.msra.mxu2 %v108_v23 }
  0x10   :  { %90 = vmatpush.msra.mxu1 %v71_v11  ;;  %132 = vmatpush.msra.mxu2 %v107_v24 }
  0x12   :  { %91 = vmatpush.msra.mxu1 %v70_v12  ;;  %133 = vmatpush.msra.mxu2 %v106_v29 }
  0x14   :  { %92 = vmatpush.msra.mxu1 %v69_v13  ;;  %134 = vmatpush.msra.mxu2 %v105_v30 }
  0x16   :  { %93 = vmatpush.msra.mxu1 %v68_v14  ;;  %135 = vmatpush.msra.mxu2 %v104_v31 }
  0x18   :  { %94 = vmatpush.msra.mxu1 %v67_v15 }
  0x1a   :  { %95 = vmatpush.msra.mxu1 %v66_v16 }
  0x1c   :  { %96 = vmatpush.msra.mxu1 %v65_v17 }
  0x1e   :  { %97 = vmatpush.msra.mxu1 %v64_v18 }
  0x20   :  { %98 = vmatpush.msra.mxu1 %v63_v19 }
  0x84   :  { %v59_v26 = vpop.f32.mrf.mxu0 }
  0x85   :  { %v60_v27 = vadd.f32 %v149_v25, %v59_v26 }
  0x87   :  { %v62_v28 = vmax.f32 %v60_v27, 0.0 }
  0x89   :  { %99 = vmatmul.f32.vlgmr.msra.gmra.mxu1 %v62_v28 }
 0x106   :  { %v100_v33 = vpop.f32.mrf.mxu1 }
 0x107   :  { %v101_v34 = vadd.f32 %v150_v32, %v100_v33 }
 0x109   :  { %v103_v35 = vmax.f32 %v101_v34, 0.0 }
 0x10b   :  { %148 = vmatmul.msk.f32.vlgmr.msra.gmra.mxu2 %vm116_vm2, %v103_v35 }
 0x18e   :  { %v137_v37 = vpop.f32.mrf.mxu2 }
 0x18f   :  { %v138_v38 = vadd.f32 %v151_v36, %v137_v37 }
 0x191   :  { %141 = vst.msk [vmem:[%s295_s7] sm:$0xff] %vm140_vm3, %v138_v38 }

</bundles_post_ra>
